<compile_context>
chip_gen: v7x
topology: tpu7x:2x2x1
jax: 0.10.0
libtpu: 0.0.40
codegen_flags: <defaults>
</compile_context>

<pallas_src>
import jax
import jax.numpy as jnp
from jax.experimental import pallas as pl
from jax.experimental.pallas import tpu as pltpu

DATA_DIM = 20


def _matvec_kernel(x_ref, w_ref, o_ref):
    # x_ref: (TILE_B, D) f32, w_ref: (1, D) f32, o_ref: (TILE_B, 1) f32
    # VPU broadcast-multiply + XLU lane reduce; no MXU involvement.
    o_ref[...] = jnp.sum(x_ref[...] * w_ref[...], axis=-1, keepdims=True)


def childnet_forward(inputs: jax.Array, w: jax.Array, *, tile_b: int = 2048,
                     min_pallas_batch: int = 512):
    """Reproduces ChildNet.forward: (inputs @ w, w)."""
    B, D = inputs.shape
    assert D == w.shape[0]

    # Tiny problems: a pallas_call's fixed launch overhead dwarfs the matvec;
    # let XLA emit the fused op instead.
    if B < max(min_pallas_batch, 8):
        return inputs @ w, w

    # Avoid extra HBM copies when dtypes already match (mem-bound path).
    x32 = inputs if inputs.dtype == jnp.float32 else inputs.astype(jnp.float32)
    w32 = w if w.dtype == jnp.float32 else w.astype(jnp.float32)
    w_row = w32.reshape(1, D)

    # Tile the batch: multiple of 8 sublanes, never larger than the batch.
    tile_b = max(8, min(tile_b, (B // 8) * 8))
    tile_b = (tile_b // 8) * 8
    grid = (pl.cdiv(B, tile_b),)  # ragged last tile is clipped by Pallas DMAs

    out = pl.pallas_call(
        _matvec_kernel,
        out_shape=jax.ShapeDtypeStruct((B, 1), jnp.float32),
        grid=grid,
        in_specs=[
            pl.BlockSpec((tile_b, D), lambda i: (i, 0)),
            pl.BlockSpec((1, D), lambda i: (0, 0)),
        ],
        out_specs=pl.BlockSpec((tile_b, 1), lambda i: (i, 0)),
        compiler_params=pltpu.CompilerParams(
            dimension_semantics=("parallel",),
        ),
    )(x32, w_row)

    outs = out[:, 0]  # match PyTorch `inputs @ w` -> shape (batch,)
    return outs, w


if __name__ == "__main__":
    key = jax.random.PRNGKey(0)
    k_x, k_w, k_x2 = jax.random.split(key, 3)

    w = jax.random.normal(k_w, (DATA_DIM,), dtype=jnp.float32)

    # Case 1: tiny batch, as the module is normally used -> XLA fast path.
    batch_small = 8
    x_small = jax.random.normal(k_x, (batch_small, DATA_DIM), dtype=jnp.float32)
    outs_small, w_out = childnet_forward(x_small, w)
    jax.block_until_ready(outs_small)
    jax.block_until_ready(w_out)
    ref_small = jnp.sum(x_small * w[None, :], axis=-1)
    assert outs_small.shape == (batch_small,)
    assert w_out.shape == (DATA_DIM,)
    assert jnp.allclose(outs_small, ref_small, atol=1e-4, rtol=1e-4)
    assert jnp.allclose(w_out, w)

    # Case 2: batch large enough to exercise the tiled Pallas kernel
    # (grid of 4 steps of 1024 rows, double-buffered, 'parallel' batch axis).
    batch_big = 4096
    x_big = jax.random.normal(k_x2, (batch_big, DATA_DIM), dtype=jnp.float32)
    outs_big, _ = childnet_forward(x_big, w, tile_b=1024)
    jax.block_until_ready(outs_big)
    ref_big = jnp.sum(x_big * w[None, :], axis=-1)
    assert outs_big.shape == (batch_big,)
    assert jnp.allclose(outs_big, ref_big, atol=1e-5, rtol=1e-5)

    # Case 3: ragged batch (not a multiple of the tile) through the Pallas path.
    batch_ragged = 1000
    x_ragged = x_big[:batch_ragged]
    outs_ragged, _ = childnet_forward(x_ragged, w, tile_b=256, min_pallas_batch=0)
    jax.block_until_ready(outs_ragged)
    ref_ragged = jnp.sum(x_ragged * w[None, :], axis=-1)
    assert outs_ragged.shape == (batch_ragged,)
    assert jnp.allclose(outs_ragged, ref_ragged, atol=1e-5, rtol=1e-5)

    print("KERNEL_OK")
</pallas_src>

<mosaic_0001>
module attributes {stable_mosaic.version = 11 : i64} {
  func.func @_matvec_kernel(%arg0: i32, %arg1: memref<1024x20xf32, #tpu.memory_space<vmem>>, %arg2: memref<1x20xf32, #tpu.memory_space<vmem>>, %arg3: memref<1024x1xf32, #tpu.memory_space<vmem>>) attributes {dimension_semantics = [#tpu.dimension_semantics<parallel>], iteration_bounds = array<i64: 4>, scalar_prefetch = 0 : i64, scratch_operands = 0 : i64, tpu.core_type = #tpu.core_type<tc>, window_params = [{transform_indices = @transform_0, window_bounds = array<i64: 1024, 20>}, {pipeline_mode = #tpu.pipeline_mode<synchronous>, transform_indices = @transform_1, window_bounds = array<i64: 1, 20>}, {transform_indices = @transform_2, window_bounds = array<i64: 1024, 1>}]} {
    %c0 = arith.constant 0 : index
    %c0_0 = arith.constant 0 : index
    %0 = vector.load %arg1[%c0, %c0_0] : memref<1024x20xf32, #tpu.memory_space<vmem>>, vector<1024x20xf32>
    %c0_1 = arith.constant 0 : index
    %c0_2 = arith.constant 0 : index
    %1 = vector.load %arg2[%c0_1, %c0_2] : memref<1x20xf32, #tpu.memory_space<vmem>>, vector<1x20xf32>
    %2 = vector.broadcast %1 : vector<1x20xf32> to vector<1024x20xf32>
    %3 = arith.mulf %0, %2 : vector<1024x20xf32>
    %cst = arith.constant dense<0.000000e+00> : vector<1024xf32>
    %4 = vector.multi_reduction <add>, %3, %cst [1] : vector<1024x20xf32> to vector<1024xf32>
    %5 = vector.shape_cast %4 : vector<1024xf32> to vector<1024x1xf32>
    %c0_3 = arith.constant 0 : index
    %c0_4 = arith.constant 0 : index
    %6 = vector.load %arg3[%c0_3, %c0_4] : memref<1024x1xf32, #tpu.memory_space<vmem>>, vector<1024x1xf32>
    tpu.vector_store %arg3[%c0_3, %c0_4], %5 {strides = array<i32>} : memref<1024x1xf32, #tpu.memory_space<vmem>>, vector<1024x1xf32>,
    return
  }
  func.func @transform_0(%arg0: i32) -> (i32, i32) {
    %c0_i32 = arith.constant 0 : i32
    %c0_i32_0 = arith.constant 0 : i32
    return %arg0, %c0_i32 : i32, i32
  }
  func.func @transform_1(%arg0: i32) -> (i32, i32) {
    %c0_i32 = arith.constant 0 : i32
    %c0_i32_0 = arith.constant 0 : i32
    %c0_i32_1 = arith.constant 0 : i32
    return %c0_i32, %c0_i32_0 : i32, i32
  }
  func.func @transform_2(%arg0: i32) -> (i32, i32) {
    %c0_i32 = arith.constant 0 : i32
    %c0_i32_0 = arith.constant 0 : i32
    return %arg0, %c0_i32 : i32, i32
  }
}

</mosaic_0001>

<bundles_post_ra>
// kernel: tpu_custom_call.1
= control target key start
LH: loop header
LB: loop body
LE: loop exit
PB: predicated region body
PF: predicated region fallthrough
CT: control target
= control target key end

     0   :  { %s1024_s9 = smov 0   ;;  %s1702_s0 = inlined_call_operand.vmem [shape: f32[4096,20], index: 0, kind: input, shape index: {}]   ;;  %s1703_s1 = inlined_call_operand.vmem [shape: f32[1,20], index: 1, kind: input, shape index: {}]   ;;  %s1704_s2 = inlined_call_operand.vmem [shape: f32[4096,1], index: 2, kind: output, shape index: {}]  }
   0x1 LB: > { %s980_s10 = sadd.s32 4294967295, %s1007_s9   ;;  %p984_p0 = scmp.ge.s32.totalorder %s1007_s9, 1  ;;  %s1007_s9 = sphi %s1024_s9, %s12_s9  }
   0x2   : > { %p113_p1 = scmp.lt.s32.totalorder %s1007_s9, 5 }
   0x4   : > { %p114_p2 = pnand %p984_p0, %p113_p1 }
   0x5   : > { %s985_s11 = sshll.u32 (!%p114_p2), %s980_s10, 7  ;;  %v1038_v0 = vld [vmem:[%s1703_s1] ss:$0 sm:$0xff] (!%p114_p2)  ;;  %vm410_vm0 = vcmask (!%p114_p2), 162816   ;;  %vm795_vm1 = vcmask (!%p114_p2), 7168  }
   0x6   : > { %117 = sbr.rel (%p114_p2) target bundleno = 415 (0x19f), region = 28  ;;  %p136_p3 = scmp.lt.s32.totalorder (!%p114_p2), %s985_s11, 511 }
   0xd   : > { %s1706_s11 = smov (!%p136_p3, %s985_s11), 511 }
   0xe   : > { %s986_s12 = sshll.u32 %s1706_s11, 3 }
   0xf   : > { %s1045_s17 = scalar_lea.vmem %s1702_s0, %s986_s12  ;;  %s1274_s20 = scalar_lea.vmem %s1704_s2, %s986_s12 }
  0x10   : > { %v149_v1 = vld [vmem:[%s1045_s17 + $0x10] sm:$0xff]  ;;  %v147_v2 = vld [vmem:[%s1045_s17] sm:$0xff]  ;;  %v150_v3 = vld [vmem:[%s1045_s17 + $0x18] sm:$0xff] }
  0x11   : > { %v284_v4 = vmul.f32 %v1038_v0, %v149_v1  ;;  %v282_v5 = vmul.f32 %v1038_v0, %v147_v2  ;;  %v285_v6 = vmul.f32 %v1038_v0, %v150_v3  ;;  %v148_v7 = vld [vmem:[%s1045_s17 + $0x8] sm:$0xff]  ;;  %v151_v10 = vld [vmem:[%s1045_s17 + $0x20] sm:$0xff]  ;;  %v154_v17 = vld [vmem:[%s1045_s17 + $0x38] sm:$0xff] }
  0x12   : > { %v283_v8 = vmul.f32 %v1038_v0, %v148_v7  ;;  %v152_v9 = vld [vmem:[%s1045_s17 + $0x28] sm:$0xff]  ;;  %v286_v16 = vmul.f32 %v1038_v0, %v151_v10  ;;  %v153_v18 = vld [vmem:[%s1045_s17 + $0x30] sm:$0xff]  ;;  %v289_v21 = vmul.f32 %v1038_v0, %v154_v17  ;;  %v155_v24 = vld [vmem:[%s1045_s17 + $0x40] sm:$0xff] }
  0x13   : > { %v417_v11 = vsel %vm410_vm0, %v284_v4, 0.0  ;;  %v411_v12 = vsel %vm410_vm0, %v282_v5, 0.0  ;;  %v420_v13 = vsel %vm410_vm0, %v285_v6, 0.0  ;;  %v287_v15 = vmul.f32 %v1038_v0, %v152_v9  ;;  %v156_v23 = vld [vmem:[%s1045_s17 + $0x48] sm:$0xff]  ;;  %v158_v29 = vld [vmem:[%s1045_s17 + $0x58] sm:$0xff]  ;;  %v157_v30 = vld [vmem:[%s1045_s17 + $0x50] sm:$0xff] }
  0x14   : > { %418 = vadd.xlane.f32.xlu1 %v417_v11  ;;  %412 = vadd.xlane.f32.xlu0 %v411_v12  ;;  %v414_v14 = vsel %vm410_vm0, %v283_v8, 0.0  ;;  %v423_v20 = vsel %vm410_vm0, %v286_v16, 0.0  ;;  %v288_v22 = vmul.f32 %v1038_v0, %v153_v18  ;;  %v432_v25 = vsel %vm410_vm0, %v289_v21, 0.0  ;;  %v160_v35 = vld [vmem:[%s1045_s17 + $0x68] sm:$0xff]  ;;  %v159_v36 = vld [vmem:[%s1045_s17 + $0x60] sm:$0xff]  ;;  %v162_v41 = vld [vmem:[%s1045_s17 + $0x78] sm:$0xff] }
  0x15   : > { %v426_v19 = vsel %vm410_vm0, %v287_v15, 0.0  ;;  %v291_v27 = vmul.f32 %v1038_v0, %v156_v23  ;;  %v290_v28 = vmul.f32 %v1038_v0, %v155_v24  ;;  %v293_v33 = vmul.f32 %v1038_v0, %v158_v29  ;;  %v161_v42 = vld [vmem:[%s1045_s17 + $0x70] sm:$0xff]  ;;  %v164_v47 = vld [vmem:[%s1045_s17 + $0x88] sm:$0xff]  ;;  %v163_v48 = vld [vmem:[%s1045_s17 + $0x80] sm:$0xff] }
  0x16   : > { %v429_v26 = vsel %vm410_vm0, %v288_v22, 0.0  ;;  %v292_v34 = vmul.f32 %v1038_v0, %v157_v30  ;;  %v295_v39 = vmul.f32 %v1038_v0, %v160_v35  ;;  %v294_v40 = vmul.f32 %v1038_v0, %v159_v36  ;;  %v166_v53 = vld [vmem:[%s1045_s17 + $0x98] sm:$0xff]  ;;  %v165_v54 = vld [vmem:[%s1045_s17 + $0x90] sm:$0xff]  ;;  %v168_v59 = vld [vmem:[%s1045_s17 + $0xa8] sm:$0xff] }
  0x17   : > { %v438_v31 = vsel %vm410_vm0, %v291_v27, 0.0  ;;  %v435_v32 = vsel %vm410_vm0, %v290_v28, 0.0  ;;  %v444_v37 = vsel %vm410_vm0, %v293_v33, 0.0  ;;  %v297_v45 = vmul.f32 %v1038_v0, %v162_v41  ;;  %v167_v60 = vld [vmem:[%s1045_s17 + $0xa0] sm:$0xff]  ;;  %v170_v2 = vld [vmem:[%s1045_s17 + $0xb8] sm:$0xff]  ;;  %v169_v3 = vld [vmem:[%s1045_s17 + $0xb0] sm:$0xff] }
  0x18   : > { %421 = vadd.xlane.f32.xlu1 %v420_v13  ;;  %415 = vadd.xlane.f32.xlu0 %v414_v14  ;;  %v441_v38 = vsel %vm410_vm0, %v292_v34, 0.0  ;;  %v450_v43 = vsel %vm410_vm0, %v295_v39, 0.0  ;;  %v447_v44 = vsel %vm410_vm0, %v294_v40, 0.0  ;;  %v296_v46 = vmul.f32 %v1038_v0, %v161_v42  ;;  %v172_v8 = vld [vmem:[%s1045_s17 + $0xc8] sm:$0xff]  ;;  %v171_v9 = vld [vmem:[%s1045_s17 + $0xc0] sm:$0xff]  ;;  %v174_v14 = vld [vmem:[%s1045_s17 + $0xd8] sm:$0xff] }
  0x19   : > { %v456_v49 = vsel %vm410_vm0, %v297_v45, 0.0  ;;  %v299_v51 = vmul.f32 %v1038_v0, %v164_v47  ;;  %v298_v52 = vmul.f32 %v1038_v0, %v163_v48  ;;  %v301_v57 = vmul.f32 %v1038_v0, %v166_v53  ;;  %v173_v15 = vld [vmem:[%s1045_s17 + $0xd0] sm:$0xff]  ;;  %v175_v21 = vld [vmem:[%s1045_s17 + $0xe0] sm:$0xff] }
  0x1a   : > { %v453_v50 = vsel %vm410_vm0, %v296_v46, 0.0  ;;  %v300_v58 = vmul.f32 %v1038_v0, %v165_v54  ;;  %v303_v63 = vmul.f32 %v1038_v0, %v168_v59  ;;  %v302_v1 = vmul.f32 %v1038_v0, %v167_v60  ;;  %v177_v27 = vld [vmem:[%s1045_s17 + $0xf0] sm:$0xff]  ;;  %v179_v33 = vld [vmem:[%s1045_s17 + $0x100] sm:$0xff] }
  0x1b   : > { %v462_v55 = vsel %vm410_vm0, %v299_v51, 0.0  ;;  %v459_v56 = vsel %vm410_vm0, %v298_v52, 0.0  ;;  %v468_v61 = vsel %vm410_vm0, %v301_v57, 0.0  ;;  %v305_v6 = vmul.f32 %v1038_v0, %v170_v2  ;;  %v181_v39 = vld [vmem:[%s1045_s17 + $0x110] sm:$0xff]  ;;  %v183_v45 = vld [vmem:[%s1045_s17 + $0x120] sm:$0xff] }
  0x1c   : > { %427 = vadd.xlane.f32.xlu1 %v426_v19  ;;  %424 = vadd.xlane.f32.xlu0 %v423_v20  ;;  %v465_v62 = vsel %vm410_vm0, %v300_v58, 0.0  ;;  %v474_v4 = vsel %vm410_vm0, %v303_v63, 0.0  ;;  %v471_v5 = vsel %vm410_vm0, %v302_v1, 0.0  ;;  %v304_v7 = vmul.f32 %v1038_v0, %v169_v3  ;;  %v176_v20 = vld [vmem:[%s1045_s17 + $0xe8] sm:$0xff]  ;;  %v185_v51 = vld [vmem:[%s1045_s17 + $0x130] sm:$0xff]  ;;  %v187_v57 = vld [vmem:[%s1045_s17 + $0x140] sm:$0xff] }
  0x1d   : > { %v480_v10 = vsel %vm410_vm0, %v305_v6, 0.0  ;;  %v307_v12 = vmul.f32 %v1038_v0, %v172_v8  ;;  %v306_v13 = vmul.f32 %v1038_v0, %v171_v9  ;;  %v309_v18 = vmul.f32 %v1038_v0, %v174_v14  ;;  %v189_v63 = vld [vmem:[%s1045_s17 + $0x150] sm:$0xff]  ;;  %v191_v6 = vld [vmem:[%s1045_s17 + $0x160] sm:$0xff] }
  0x1e   : > { %v477_v11 = vsel %vm410_vm0, %v304_v7, 0.0  ;;  %v308_v19 = vmul.f32 %v1038_v0, %v173_v15  ;;  %v311_v24 = vmul.f32 %v1038_v0, %v176_v20 }
  0x1f   : > { %v486_v16 = vsel %vm410_vm0, %v307_v12, 0.0  ;;  %v483_v17 = vsel %vm410_vm0, %v306_v13, 0.0  ;;  %v492_v22 = vsel %vm410_vm0, %v309_v18, 0.0  ;;  %v193_v12 = vld [vmem:[%s1045_s17 + $0x170] sm:$0xff]  ;;  %v195_v18 = vld [vmem:[%s1045_s17 + $0x180] sm:$0xff] }
  0x20   : > { %433 = vadd.xlane.f32.xlu1 %v432_v25  ;;  %430 = vadd.xlane.f32.xlu0 %v429_v26  ;;  %v489_v23 = vsel %vm410_vm0, %v308_v19, 0.0  ;;  %v310_v25 = vmul.f32 %v1038_v0, %v175_v21  ;;  %v178_v26 = vld [vmem:[%s1045_s17 + $0xf8] sm:$0xff]  ;;  %v498_v28 = vsel %vm410_vm0, %v311_v24, 0.0  ;;  %v197_v24 = vld [vmem:[%s1045_s17 + $0x190] sm:$0xff] }
  0x21   : > { %v313_v30 = vmul.f32 %v1038_v0, %v178_v26 }
  0x22   : > { %v495_v29 = vsel %vm410_vm0, %v310_v25, 0.0 }
  0x23   : > { %v504_v34 = vsel %vm410_vm0, %v313_v30, 0.0  ;;  %v199_v30 = vld [vmem:[%s1045_s17 + $0x1a0] sm:$0xff] }
  0x24   : > { %439 = vadd.xlane.f32.xlu1 %v438_v31  ;;  %436 = vadd.xlane.f32.xlu0 %v435_v32  ;;  %v312_v31 = vmul.f32 %v1038_v0, %v177_v27  ;;  %v180_v32 = vld [vmem:[%s1045_s17 + $0x108] sm:$0xff] }
  0x25   : > { %v315_v36 = vmul.f32 %v1038_v0, %v180_v32 }
  0x26   : > { %v501_v35 = vsel %vm410_vm0, %v312_v31, 0.0 }
  0x27   : > { %v510_v40 = vsel %vm410_vm0, %v315_v36, 0.0  ;;  %v201_v36 = vld [vmem:[%s1045_s17 + $0x1b0] sm:$0xff] }
  0x28   : > { %445 = vadd.xlane.f32.xlu1 %v444_v37  ;;  %442 = vadd.xlane.f32.xlu0 %v441_v38  ;;  %v314_v37 = vmul.f32 %v1038_v0, %v179_v33  ;;  %v182_v38 = vld [vmem:[%s1045_s17 + $0x118] sm:$0xff] }
  0x29   : > { %v317_v42 = vmul.f32 %v1038_v0, %v182_v38 }
  0x2a   : > { %v507_v41 = vsel %vm410_vm0, %v314_v37, 0.0 }
  0x2b   : > { %v516_v46 = vsel %vm410_vm0, %v317_v42, 0.0  ;;  %v203_v42 = vld [vmem:[%s1045_s17 + $0x1c0] sm:$0xff] }
  0x2c   : > { %451 = vadd.xlane.f32.xlu1 %v450_v43  ;;  %448 = vadd.xlane.f32.xlu0 %v447_v44  ;;  %v316_v43 = vmul.f32 %v1038_v0, %v181_v39  ;;  %v184_v44 = vld [vmem:[%s1045_s17 + $0x128] sm:$0xff] }
  0x2d   : > { %v319_v48 = vmul.f32 %v1038_v0, %v184_v44 }
  0x2e   : > { %v513_v47 = vsel %vm410_vm0, %v316_v43, 0.0 }
  0x2f   : > { %v522_v52 = vsel %vm410_vm0, %v319_v48, 0.0  ;;  %v205_v48 = vld [vmem:[%s1045_s17 + $0x1d0] sm:$0xff] }
  0x30   : > { %457 = vadd.xlane.f32.xlu1 %v456_v49  ;;  %454 = vadd.xlane.f32.xlu0 %v453_v50  ;;  %v318_v49 = vmul.f32 %v1038_v0, %v183_v45  ;;  %v186_v50 = vld [vmem:[%s1045_s17 + $0x138] sm:$0xff] }
  0x31   : > { %v321_v54 = vmul.f32 %v1038_v0, %v186_v50 }
  0x32   : > { %v519_v53 = vsel %vm410_vm0, %v318_v49, 0.0 }
  0x33   : > { %v528_v58 = vsel %vm410_vm0, %v321_v54, 0.0  ;;  %v207_v54 = vld [vmem:[%s1045_s17 + $0x1e0] sm:$0xff] }
  0x34   : > { %463 = vadd.xlane.f32.xlu1 %v462_v55  ;;  %460 = vadd.xlane.f32.xlu0 %v459_v56  ;;  %v320_v55 = vmul.f32 %v1038_v0, %v185_v51  ;;  %v188_v56 = vld [vmem:[%s1045_s17 + $0x148] sm:$0xff] }
  0x35   : > { %v323_v60 = vmul.f32 %v1038_v0, %v188_v56 }
  0x36   : > { %v525_v59 = vsel %vm410_vm0, %v320_v55, 0.0 }
  0x37   : > { %v534_v1 = vsel %vm410_vm0, %v323_v60, 0.0  ;;  %v209_v60 = vld [vmem:[%s1045_s17 + $0x1f0] sm:$0xff] }
  0x38   : > { %469 = vadd.xlane.f32.xlu1 %v468_v61  ;;  %466 = vadd.xlane.f32.xlu0 %v465_v62  ;;  %v322_v61 = vmul.f32 %v1038_v0, %v187_v57  ;;  %v190_v62 = vld [vmem:[%s1045_s17 + $0x158] sm:$0xff] }
  0x39   : > { %v325_v3 = vmul.f32 %v1038_v0, %v190_v62 }
  0x3a   : > { %v531_v2 = vsel %vm410_vm0, %v322_v61, 0.0 }
  0x3b   : > { %v540_v7 = vsel %vm410_vm0, %v325_v3, 0.0  ;;  %v211_v3 = vld [vmem:[%s1045_s17 + $0x200] sm:$0xff] }
  0x3c   : > { %475 = vadd.xlane.f32.xlu1 %v474_v4  ;;  %472 = vadd.xlane.f32.xlu0 %v471_v5  ;;  %v324_v4 = vmul.f32 %v1038_v0, %v189_v63  ;;  %v192_v5 = vld [vmem:[%s1045_s17 + $0x168] sm:$0xff] }
  0x3d   : > { %v327_v9 = vmul.f32 %v1038_v0, %v192_v5 }
  0x3e   : > { %v537_v8 = vsel %vm410_vm0, %v324_v4, 0.0 }
  0x3f   : > { %v546_v13 = vsel %vm410_vm0, %v327_v9, 0.0  ;;  %v213_v9 = vld [vmem:[%s1045_s17 + $0x210] sm:$0xff] }
  0x40   : > { %481 = vadd.xlane.f32.xlu1 %v480_v10  ;;  %478 = vadd.xlane.f32.xlu0 %v477_v11  ;;  %v326_v10 = vmul.f32 %v1038_v0, %v191_v6  ;;  %v194_v11 = vld [vmem:[%s1045_s17 + $0x178] sm:$0xff] }
  0x41   : > { %v329_v15 = vmul.f32 %v1038_v0, %v194_v11 }
  0x42   : > { %v543_v14 = vsel %vm410_vm0, %v326_v10, 0.0 }
  0x43   : > { %v552_v19 = vsel %vm410_vm0, %v329_v15, 0.0  ;;  %v215_v15 = vld [vmem:[%s1045_s17 + $0x220] sm:$0xff] }
  0x44   : > { %487 = vadd.xlane.f32.xlu1 %v486_v16  ;;  %484 = vadd.xlane.f32.xlu0 %v483_v17  ;;  %v328_v16 = vmul.f32 %v1038_v0, %v193_v12  ;;  %v196_v17 = vld [vmem:[%s1045_s17 + $0x188] sm:$0xff] }
  0x45   : > { %v331_v21 = vmul.f32 %v1038_v0, %v196_v17 }
  0x46   : > { %v549_v20 = vsel %vm410_vm0, %v328_v16, 0.0 }
  0x47   : > { %v558_v25 = vsel %vm410_vm0, %v331_v21, 0.0  ;;  %v217_v21 = vld [vmem:[%s1045_s17 + $0x230] sm:$0xff] }
  0x48   : > { %493 = vadd.xlane.f32.xlu1 %v492_v22  ;;  %490 = vadd.xlane.f32.xlu0 %v489_v23  ;;  %v330_v22 = vmul.f32 %v1038_v0, %v195_v18  ;;  %v198_v23 = vld [vmem:[%s1045_s17 + $0x198] sm:$0xff] }
  0x49   : > { %v333_v27 = vmul.f32 %v1038_v0, %v198_v23 }
  0x4a   : > { %v555_v26 = vsel %vm410_vm0, %v330_v22, 0.0 }
  0x4b   : > { %v564_v31 = vsel %vm410_vm0, %v333_v27, 0.0  ;;  %v219_v27 = vld [vmem:[%s1045_s17 + $0x240] sm:$0xff] }
  0x4c   : > { %499 = vadd.xlane.f32.xlu1 %v498_v28  ;;  %496 = vadd.xlane.f32.xlu0 %v495_v29  ;;  %v332_v28 = vmul.f32 %v1038_v0, %v197_v24  ;;  %v200_v29 = vld [vmem:[%s1045_s17 + $0x1a8] sm:$0xff] }
  0x4d   : > { %v335_v33 = vmul.f32 %v1038_v0, %v200_v29 }
  0x4e   : > { %v561_v32 = vsel %vm410_vm0, %v332_v28, 0.0 }
  0x4f   : > { %v570_v37 = vsel %vm410_vm0, %v335_v33, 0.0  ;;  %v221_v33 = vld [vmem:[%s1045_s17 + $0x250] sm:$0xff] }
  0x50   : > { %505 = vadd.xlane.f32.xlu1 %v504_v34  ;;  %502 = vadd.xlane.f32.xlu0 %v501_v35  ;;  %v334_v34 = vmul.f32 %v1038_v0, %v199_v30  ;;  %v202_v35 = vld [vmem:[%s1045_s17 + $0x1b8] sm:$0xff] }
  0x51   : > { %v337_v39 = vmul.f32 %v1038_v0, %v202_v35 }
  0x52   : > { %v567_v38 = vsel %vm410_vm0, %v334_v34, 0.0 }
  0x53   : > { %v576_v43 = vsel %vm410_vm0, %v337_v39, 0.0  ;;  %v356_v39 = vmul.f32 %v1038_v0, %v221_v33  ;;  %v238_v33 = vld [vmem:[%s1045_s17 + $0x2d8] sm:$0xff] }
  0x54   : > { %511 = vadd.xlane.f32.xlu1 %v510_v40  ;;  %508 = vadd.xlane.f32.xlu0 %v507_v41  ;;  %v336_v40 = vmul.f32 %v1038_v0, %v201_v36  ;;  %v204_v41 = vld [vmem:[%s1045_s17 + $0x1c8] sm:$0xff] }
  0x55   : > { %v339_v45 = vmul.f32 %v1038_v0, %v204_v41  ;;  %v223_v41 = vld [vmem:[%s1045_s17 + $0x260] sm:$0xff] }
  0x56   : > { %v573_v44 = vsel %vm410_vm0, %v336_v40, 0.0  ;;  %v224_v40 = vld [vmem:[%s1045_s17 + $0x268] sm:$0xff] }
  0x57   : > { %v582_v49 = vsel %vm410_vm0, %v339_v45, 0.0  ;;  %v633_v45 = vsel %vm410_vm0, %v356_v39, 0.0  ;;  %v373_v39 = vmul.f32 %v1038_v0, %v238_v33 }
  0x58   : > { %517 = vadd.xlane.f32.xlu1 %v516_v46  ;;  %514 = vadd.xlane.f32.xlu0 %v513_v47  ;;  %v338_v46 = vmul.f32 %v1038_v0, %v203_v42  ;;  %v206_v47 = vld [vmem:[%s1045_s17 + $0x1d8] sm:$0xff] }
  0x59   : > { %v341_v51 = vmul.f32 %v1038_v0, %v206_v47  ;;  %v358_v47 = vmul.f32 %v1038_v0, %v223_v41  ;;  %v240_v41 = vld [vmem:[%s1045_s17 + $0x2e8] sm:$0xff] }
  0x5a   : > { %v579_v50 = vsel %vm410_vm0, %v338_v46, 0.0  ;;  %v359_v46 = vmul.f32 %v1038_v0, %v224_v40 }
  0x5b   : > { %v588_v55 = vsel %vm410_vm0, %v341_v51, 0.0 }
  0x5c   : > { %523 = vadd.xlane.f32.xlu1 %v522_v52  ;;  %520 = vadd.xlane.f32.xlu0 %v519_v53  ;;  %v340_v52 = vmul.f32 %v1038_v0, %v205_v48  ;;  %v208_v53 = vld [vmem:[%s1045_s17 + $0x1e8] sm:$0xff]  ;;  %v226_v48 = vld [vmem:[%s1045_s17 + $0x278] sm:$0xff] }
  0x5d   : > { %v343_v57 = vmul.f32 %v1038_v0, %v208_v53  ;;  %v639_v53 = vsel %vm410_vm0, %v358_v47, 0.0  ;;  %v375_v47 = vmul.f32 %v1038_v0, %v240_v41 }
  0x5e   : > { %v585_v56 = vsel %vm410_vm0, %v340_v52, 0.0  ;;  %v642_v52 = vsel %vm410_vm0, %v359_v46, 0.0 }
  0x5f   : > { %v594_v61 = vsel %vm410_vm0, %v343_v57, 0.0  ;;  %v227_v57 = vld [vmem:[%s1045_s17 + $0x280] sm:$0xff] }
  0x60   : > { %529 = vadd.xlane.f32.xlu1 %v528_v58  ;;  %526 = vadd.xlane.f32.xlu0 %v525_v59  ;;  %v342_v58 = vmul.f32 %v1038_v0, %v207_v54  ;;  %v210_v59 = vld [vmem:[%s1045_s17 + $0x1f8] sm:$0xff]  ;;  %v361_v54 = vmul.f32 %v1038_v0, %v226_v48 }
  0x61   : > { %v345_v63 = vmul.f32 %v1038_v0, %v210_v59 }
  0x62   : > { %v591_v62 = vsel %vm410_vm0, %v342_v58, 0.0 }
  0x63   : > { %v600_v4 = vsel %vm410_vm0, %v345_v63, 0.0  ;;  %v362_v63 = vmul.f32 %v1038_v0, %v227_v57  ;;  %v244_v57 = vld [vmem:[%s1045_s17 + $0x308] sm:$0xff] }
  0x64   : > { %535 = vadd.xlane.f32.xlu1 %v534_v1  ;;  %532 = vadd.xlane.f32.xlu0 %v531_v2  ;;  %v344_v1 = vmul.f32 %v1038_v0, %v209_v60  ;;  %v212_v2 = vld [vmem:[%s1045_s17 + $0x208] sm:$0xff]  ;;  %v648_v60 = vsel %vm410_vm0, %v361_v54, 0.0 }
  0x65   : > { %v347_v6 = vmul.f32 %v1038_v0, %v212_v2  ;;  %v229_v2 = vld [vmem:[%s1045_s17 + $0x290] sm:$0xff] }
  0x66   : > { %v597_v5 = vsel %vm410_vm0, %v344_v1, 0.0  ;;  %v230_v1 = vld [vmem:[%s1045_s17 + $0x298] sm:$0xff] }
  0x67   : > { %v606_v10 = vsel %vm410_vm0, %v347_v6, 0.0  ;;  %v651_v6 = vsel %vm410_vm0, %v362_v63, 0.0  ;;  %v379_v63 = vmul.f32 %v1038_v0, %v244_v57 }
  0x68   : > { %541 = vadd.xlane.f32.xlu1 %v540_v7  ;;  %538 = vadd.xlane.f32.xlu0 %v537_v8  ;;  %v346_v7 = vmul.f32 %v1038_v0, %v211_v3  ;;  %v214_v8 = vld [vmem:[%s1045_s17 + $0x218] sm:$0xff] }
  0x69   : > { %v349_v12 = vmul.f32 %v1038_v0, %v214_v8  ;;  %v364_v8 = vmul.f32 %v1038_v0, %v229_v2  ;;  %v246_v2 = vld [vmem:[%s1045_s17 + $0x318] sm:$0xff] }
  0x6a   : > { %v603_v11 = vsel %vm410_vm0, %v346_v7, 0.0  ;;  %v365_v7 = vmul.f32 %v1038_v0, %v230_v1 }
  0x6b   : > { %v612_v16 = vsel %vm410_vm0, %v349_v12, 0.0 }
  0x6c   : > { %547 = vadd.xlane.f32.xlu1 %v546_v13  ;;  %544 = vadd.xlane.f32.xlu0 %v543_v14  ;;  %v348_v13 = vmul.f32 %v1038_v0, %v213_v9  ;;  %v216_v14 = vld [vmem:[%s1045_s17 + $0x228] sm:$0xff] }
  0x6d   : > { %v351_v18 = vmul.f32 %v1038_v0, %v216_v14  ;;  %v232_v9 = vld [vmem:[%s1045_s17 + $0x2a8] sm:$0xff]  ;;  %v657_v14 = vsel %vm410_vm0, %v364_v8, 0.0  ;;  %v381_v8 = vmul.f32 %v1038_v0, %v246_v2 }
  0x6e   : > { %v609_v17 = vsel %vm410_vm0, %v348_v13, 0.0  ;;  %v660_v13 = vsel %vm410_vm0, %v365_v7, 0.0 }
  0x6f   : > { %v618_v22 = vsel %vm410_vm0, %v351_v18, 0.0  ;;  %v233_v18 = vld [vmem:[%s1045_s17 + $0x2b0] sm:$0xff] }
  0x70   : > { %553 = vadd.xlane.f32.xlu1 %v552_v19  ;;  %550 = vadd.xlane.f32.xlu0 %v549_v20  ;;  %v350_v19 = vmul.f32 %v1038_v0, %v215_v15  ;;  %v218_v20 = vld [vmem:[%s1045_s17 + $0x238] sm:$0xff]  ;;  %v367_v15 = vmul.f32 %v1038_v0, %v232_v9 }
  0x71   : > { %v353_v24 = vmul.f32 %v1038_v0, %v218_v20 }
  0x72   : > { %v615_v23 = vsel %vm410_vm0, %v350_v19, 0.0 }
  0x73   : > { %v624_v28 = vsel %vm410_vm0, %v353_v24, 0.0  ;;  %v368_v24 = vmul.f32 %v1038_v0, %v233_v18  ;;  %v250_v18 = vld [vmem:[%s1045_s17 + $0x338] sm:$0xff] }
  0x74   : > { %559 = vadd.xlane.f32.xlu1 %v558_v25  ;;  %556 = vadd.xlane.f32.xlu0 %v555_v26  ;;  %v352_v25 = vmul.f32 %v1038_v0, %v217_v21  ;;  %v220_v26 = vld [vmem:[%s1045_s17 + $0x248] sm:$0xff]  ;;  %v666_v21 = vsel %vm410_vm0, %v367_v15, 0.0 }
  0x75   : > { %v355_v30 = vmul.f32 %v1038_v0, %v220_v26  ;;  %v235_v26 = vld [vmem:[%s1045_s17 + $0x2c0] sm:$0xff] }
  0x76   : > { %v621_v29 = vsel %vm410_vm0, %v352_v25, 0.0  ;;  %v236_v25 = vld [vmem:[%s1045_s17 + $0x2c8] sm:$0xff] }
  0x77   : > { %v630_v36 = vsel %vm410_vm0, %v355_v30, 0.0  ;;  %v669_v30 = vsel %vm410_vm0, %v368_v24, 0.0  ;;  %v385_v24 = vmul.f32 %v1038_v0, %v250_v18 }
  0x78   : > { %565 = vadd.xlane.f32.xlu1 %v564_v31  ;;  %562 = vadd.xlane.f32.xlu0 %v561_v32  ;;  %v354_v31 = vmul.f32 %v1038_v0, %v219_v27  ;;  %v222_v32 = vld [vmem:[%s1045_s17 + $0x258] sm:$0xff] }
  0x7c   : > { %571 = vadd.xlane.f32.xlu1 %v570_v37  ;;  %568 = vadd.xlane.f32.xlu0 %v567_v38  ;;  %v627_v37 = vsel %vm410_vm0, %v354_v31, 0.0  ;;  %v357_v38 = vmul.f32 %v1038_v0, %v222_v32  ;;  %v371_v31 = vmul.f32 %v1038_v0, %v236_v25  ;;  %v370_v32 = vmul.f32 %v1038_v0, %v235_v26  ;;  %v252_v26 = vld [vmem:[%s1045_s17 + $0x348] sm:$0xff] }
  0x80   : > { %577 = vadd.xlane.f32.xlu1 %v576_v43  ;;  %574 = vadd.xlane.f32.xlu0 %v573_v44  ;;  %v636_v44 = vsel %vm410_vm0, %v357_v38, 0.0  ;;  %v675_v38 = vsel %vm410_vm0, %v370_v32, 0.0  ;;  %v387_v32 = vmul.f32 %v1038_v0, %v252_v26 }
  0x84   : > { %583 = vadd.xlane.f32.xlu1 %v582_v49  ;;  %580 = vadd.xlane.f32.xlu0 %v579_v50  ;;  %v225_v49 = vld [vmem:[%s1045_s17 + $0x270] sm:$0xff] }
  0x88   : > { %589 = vadd.xlane.f32.xlu1 %v588_v55  ;;  %586 = vadd.xlane.f32.xlu0 %v585_v56  ;;  %v360_v55 = vmul.f32 %v1038_v0, %v225_v49  ;;  %v228_v56 = vld [vmem:[%s1045_s17 + $0x288] sm:$0xff]  ;;  %v242_v49 = vld [vmem:[%s1045_s17 + $0x2f8] sm:$0xff] }
  0x8c   : > { %595 = vadd.xlane.f32.xlu1 %v594_v61  ;;  %592 = vadd.xlane.f32.xlu0 %v591_v62  ;;  %v645_v61 = vsel %vm410_vm0, %v360_v55, 0.0  ;;  %v363_v62 = vmul.f32 %v1038_v0, %v228_v56  ;;  %v377_v55 = vmul.f32 %v1038_v0, %v242_v49 }
  0x90   : > { %601 = vadd.xlane.f32.xlu1 %v600_v4  ;;  %598 = vadd.xlane.f32.xlu0 %v597_v5  ;;  %v654_v5 = vsel %vm410_vm0, %v363_v62, 0.0 }
  0x94   : > { %607 = vadd.xlane.f32.xlu1 %v606_v10  ;;  %604 = vadd.xlane.f32.xlu0 %v603_v11  ;;  %v231_v10 = vld [vmem:[%s1045_s17 + $0x2a0] sm:$0xff] }
  0x98   : > { %613 = vadd.xlane.f32.xlu1 %v612_v16  ;;  %610 = vadd.xlane.f32.xlu0 %v609_v17  ;;  %v366_v16 = vmul.f32 %v1038_v0, %v231_v10  ;;  %v234_v17 = vld [vmem:[%s1045_s17 + $0x2b8] sm:$0xff]  ;;  %v248_v10 = vld [vmem:[%s1045_s17 + $0x328] sm:$0xff] }
  0x9c   : > { %619 = vadd.xlane.f32.xlu1 %v618_v22  ;;  %616 = vadd.xlane.f32.xlu0 %v615_v23  ;;  %v663_v22 = vsel %vm410_vm0, %v366_v16, 0.0  ;;  %v369_v23 = vmul.f32 %v1038_v0, %v234_v17  ;;  %v383_v16 = vmul.f32 %v1038_v0, %v248_v10 }
  0xa0   : > { %625 = vadd.xlane.f32.xlu1 %v624_v28  ;;  %622 = vadd.xlane.f32.xlu0 %v621_v29  ;;  %v672_v29 = vsel %vm410_vm0, %v369_v23, 0.0 }
  0xa1   : > { %v419_v34 = vpop.xlane.xlu1 %418  ;;  %v413_v35 = vpop.xlane.xlu0 %412 }
  0xa2   : > { %798 = vst.msk [vmem:[%s1274_s20 + $0x10] sm:$0xff] %vm795_vm1, %v419_v34  ;;  %796 = vst.msk [vmem:[%s1274_s20] sm:$0xff] %vm795_vm1, %v413_v35  ;;  %v237_v34 = vld [vmem:[%s1045_s17 + $0x2d0] sm:$0xff] }
  0xa3   : > { %v372_v40 = vmul.f32 %v1038_v0, %v237_v34  ;;  %v254_v34 = vld [vmem:[%s1045_s17 + $0x358] sm:$0xff] }
  0xa4   : > { %631 = vadd.xlane.f32.xlu1 %v630_v36  ;;  %628 = vadd.xlane.f32.xlu0 %v627_v37  ;;  %v678_v37 = vsel %vm410_vm0, %v371_v31, 0.0 }
  0xa5   : > { %v422_v42 = vpop.xlane.xlu1 %421  ;;  %v416_v43 = vpop.xlane.xlu0 %415  ;;  %v681_v46 = vsel %vm410_vm0, %v372_v40, 0.0  ;;  %v389_v40 = vmul.f32 %v1038_v0, %v254_v34 }
  0xa6   : > { %799 = vst.msk [vmem:[%s1274_s20 + $0x18] sm:$0xff] %vm795_vm1, %v422_v42  ;;  %797 = vst.msk [vmem:[%s1274_s20 + $0x8] sm:$0xff] %vm795_vm1, %v416_v43  ;;  %v239_v42 = vld [vmem:[%s1045_s17 + $0x2e0] sm:$0xff] }
  0xa7   : > { %v374_v48 = vmul.f32 %v1038_v0, %v239_v42  ;;  %v256_v42 = vld [vmem:[%s1045_s17 + $0x368] sm:$0xff] }
  0xa8   : > { %637 = vadd.xlane.f32.xlu1 %v636_v44  ;;  %634 = vadd.xlane.f32.xlu0 %v633_v45  ;;  %v684_v45 = vsel %vm410_vm0, %v373_v39, 0.0 }
  0xa9   : > { %v428_v50 = vpop.xlane.xlu1 %427  ;;  %v425_v51 = vpop.xlane.xlu0 %424  ;;  %v687_v54 = vsel %vm410_vm0, %v374_v48, 0.0  ;;  %v391_v48 = vmul.f32 %v1038_v0, %v256_v42 }
  0xaa   : > { %801 = vst.msk [vmem:[%s1274_s20 + $0x28] sm:$0xff] %vm795_vm1, %v428_v50  ;;  %800 = vst.msk [vmem:[%s1274_s20 + $0x20] sm:$0xff] %vm795_vm1, %v425_v51  ;;  %v241_v50 = vld [vmem:[%s1045_s17 + $0x2f0] sm:$0xff] }
  0xab   : > { %v376_v56 = vmul.f32 %v1038_v0, %v241_v50  ;;  %v258_v50 = vld [vmem:[%s1045_s17 + $0x378] sm:$0xff] }
  0xac   : > { %643 = vadd.xlane.f32.xlu1 %v642_v52  ;;  %640 = vadd.xlane.f32.xlu0 %v639_v53  ;;  %v690_v53 = vsel %vm410_vm0, %v375_v47, 0.0 }
  0xad   : > { %v434_v58 = vpop.xlane.xlu1 %433  ;;  %v431_v59 = vpop.xlane.xlu0 %430  ;;  %v693_v62 = vsel %vm410_vm0, %v376_v56, 0.0 }
  0xae   : > { %803 = vst.msk [vmem:[%s1274_s20 + $0x38] sm:$0xff] %vm795_vm1, %v434_v58  ;;  %802 = vst.msk [vmem:[%s1274_s20 + $0x30] sm:$0xff] %vm795_vm1, %v431_v59  ;;  %v243_v58 = vld [vmem:[%s1045_s17 + $0x300] sm:$0xff] }
  0xaf   : > { %v378_v1 = vmul.f32 %v1038_v0, %v243_v58  ;;  %v260_v58 = vld [vmem:[%s1045_s17 + $0x388] sm:$0xff] }
  0xb0   : > { %649 = vadd.xlane.f32.xlu1 %v648_v60  ;;  %646 = vadd.xlane.f32.xlu0 %v645_v61  ;;  %v696_v61 = vsel %vm410_vm0, %v377_v55, 0.0 }
  0xb1   : > { %v440_v3 = vpop.xlane.xlu1 %439  ;;  %v437_v4 = vpop.xlane.xlu0 %436  ;;  %v699_v7 = vsel %vm410_vm0, %v378_v1, 0.0 }
  0xb2   : > { %805 = vst.msk [vmem:[%s1274_s20 + $0x48] sm:$0xff] %vm795_vm1, %v440_v3  ;;  %804 = vst.msk [vmem:[%s1274_s20 + $0x40] sm:$0xff] %vm795_vm1, %v437_v4  ;;  %v245_v3 = vld [vmem:[%s1045_s17 + $0x310] sm:$0xff] }
  0xb3   : > { %v380_v9 = vmul.f32 %v1038_v0, %v245_v3  ;;  %v262_v3 = vld [vmem:[%s1045_s17 + $0x398] sm:$0xff] }
  0xb4   : > { %655 = vadd.xlane.f32.xlu1 %v654_v5  ;;  %652 = vadd.xlane.f32.xlu0 %v651_v6  ;;  %v702_v6 = vsel %vm410_vm0, %v379_v63, 0.0 }
  0xb5   : > { %v446_v11 = vpop.xlane.xlu1 %445  ;;  %v443_v12 = vpop.xlane.xlu0 %442  ;;  %v705_v15 = vsel %vm410_vm0, %v380_v9, 0.0 }
  0xb6   : > { %807 = vst.msk [vmem:[%s1274_s20 + $0x58] sm:$0xff] %vm795_vm1, %v446_v11  ;;  %806 = vst.msk [vmem:[%s1274_s20 + $0x50] sm:$0xff] %vm795_vm1, %v443_v12  ;;  %v247_v11 = vld [vmem:[%s1045_s17 + $0x320] sm:$0xff] }
  0xb7   : > { %v382_v17 = vmul.f32 %v1038_v0, %v247_v11  ;;  %v264_v11 = vld [vmem:[%s1045_s17 + $0x3a8] sm:$0xff] }
  0xb8   : > { %661 = vadd.xlane.f32.xlu1 %v660_v13  ;;  %658 = vadd.xlane.f32.xlu0 %v657_v14  ;;  %v708_v14 = vsel %vm410_vm0, %v381_v8, 0.0 }
  0xb9   : > { %v452_v19 = vpop.xlane.xlu1 %451  ;;  %v449_v20 = vpop.xlane.xlu0 %448  ;;  %v711_v23 = vsel %vm410_vm0, %v382_v17, 0.0 }
  0xba   : > { %809 = vst.msk [vmem:[%s1274_s20 + $0x68] sm:$0xff] %vm795_vm1, %v452_v19  ;;  %808 = vst.msk [vmem:[%s1274_s20 + $0x60] sm:$0xff] %vm795_vm1, %v449_v20  ;;  %v249_v19 = vld [vmem:[%s1045_s17 + $0x330] sm:$0xff] }
  0xbb   : > { %v384_v25 = vmul.f32 %v1038_v0, %v249_v19  ;;  %v266_v19 = vld [vmem:[%s1045_s17 + $0x3b8] sm:$0xff] }
  0xbc   : > { %667 = vadd.xlane.f32.xlu1 %v666_v21  ;;  %664 = vadd.xlane.f32.xlu0 %v663_v22  ;;  %v714_v22 = vsel %vm410_vm0, %v383_v16, 0.0 }
  0xbd   : > { %v458_v27 = vpop.xlane.xlu1 %457  ;;  %v455_v28 = vpop.xlane.xlu0 %454  ;;  %v717_v31 = vsel %vm410_vm0, %v384_v25, 0.0 }
  0xbe   : > { %811 = vst.msk [vmem:[%s1274_s20 + $0x78] sm:$0xff] %vm795_vm1, %v458_v27  ;;  %810 = vst.msk [vmem:[%s1274_s20 + $0x70] sm:$0xff] %vm795_vm1, %v455_v28  ;;  %v251_v27 = vld [vmem:[%s1045_s17 + $0x340] sm:$0xff] }
  0xbf   : > { %v386_v33 = vmul.f32 %v1038_v0, %v251_v27  ;;  %v268_v27 = vld [vmem:[%s1045_s17 + $0x3c8] sm:$0xff] }
  0xc0   : > { %673 = vadd.xlane.f32.xlu1 %v672_v29  ;;  %670 = vadd.xlane.f32.xlu0 %v669_v30  ;;  %v720_v30 = vsel %vm410_vm0, %v385_v24, 0.0 }
  0xc1   : > { %v464_v35 = vpop.xlane.xlu1 %463  ;;  %v461_v36 = vpop.xlane.xlu0 %460  ;;  %v723_v39 = vsel %vm410_vm0, %v386_v33, 0.0 }
  0xc2   : > { %813 = vst.msk [vmem:[%s1274_s20 + $0x88] sm:$0xff] %vm795_vm1, %v464_v35  ;;  %812 = vst.msk [vmem:[%s1274_s20 + $0x80] sm:$0xff] %vm795_vm1, %v461_v36  ;;  %v253_v35 = vld [vmem:[%s1045_s17 + $0x350] sm:$0xff] }
  0xc3   : > { %v388_v41 = vmul.f32 %v1038_v0, %v253_v35  ;;  %v270_v35 = vld [vmem:[%s1045_s17 + $0x3d8] sm:$0xff] }
  0xc4   : > { %679 = vadd.xlane.f32.xlu1 %v678_v37  ;;  %676 = vadd.xlane.f32.xlu0 %v675_v38  ;;  %v726_v38 = vsel %vm410_vm0, %v387_v32, 0.0 }
  0xc5   : > { %v470_v43 = vpop.xlane.xlu1 %469  ;;  %v467_v44 = vpop.xlane.xlu0 %466  ;;  %v729_v47 = vsel %vm410_vm0, %v388_v41, 0.0 }
  0xc6   : > { %815 = vst.msk [vmem:[%s1274_s20 + $0x98] sm:$0xff] %vm795_vm1, %v470_v43  ;;  %814 = vst.msk [vmem:[%s1274_s20 + $0x90] sm:$0xff] %vm795_vm1, %v467_v44  ;;  %v255_v43 = vld [vmem:[%s1045_s17 + $0x360] sm:$0xff] }
  0xc7   : > { %v390_v49 = vmul.f32 %v1038_v0, %v255_v43  ;;  %v1461_v0 = vld [vmem:[%s1703_s1] ss:$0 sm:$0xff]  ;;  %v272_v43 = vld [vmem:[%s1045_s17 + $0x3e8] sm:$0xff] }
  0xc8   : > { %685 = vadd.xlane.f32.xlu1 %v684_v45  ;;  %682 = vadd.xlane.f32.xlu0 %v681_v46  ;;  %v732_v46 = vsel %vm410_vm0, %v389_v40, 0.0  ;;  %v393_v56 = vmul.f32 %v1461_v0, %v258_v50  ;;  %v395_v1 = vmul.f32 %v1461_v0, %v260_v58  ;;  %v397_v9 = vmul.f32 %v1461_v0, %v262_v3 }
  0xc9   : > { %v476_v51 = vpop.xlane.xlu1 %475  ;;  %v473_v52 = vpop.xlane.xlu0 %472  ;;  %v735_v55 = vsel %vm410_vm0, %v390_v49, 0.0  ;;  %v399_v17 = vmul.f32 %v1461_v0, %v264_v11  ;;  %v401_v25 = vmul.f32 %v1461_v0, %v266_v19  ;;  %v403_v33 = vmul.f32 %v1461_v0, %v268_v27 }
  0xca   : > { %817 = vst.msk [vmem:[%s1274_s20 + $0xa8] sm:$0xff] %vm795_vm1, %v476_v51  ;;  %816 = vst.msk [vmem:[%s1274_s20 + $0xa0] sm:$0xff] %vm795_vm1, %v473_v52  ;;  %v257_v51 = vld [vmem:[%s1045_s17 + $0x370] sm:$0xff]  ;;  %v405_v41 = vmul.f32 %v1461_v0, %v270_v35  ;;  %v407_v49 = vmul.f32 %v1461_v0, %v272_v43 }
  0xcb   : > { %v392_v57 = vmul.f32 %v1461_v0, %v257_v51  ;;  %v274_v51 = vld [vmem:[%s1045_s17 + $0x3f8] sm:$0xff] }
  0xcc   : > { %691 = vadd.xlane.f32.xlu1 %v690_v53  ;;  %688 = vadd.xlane.f32.xlu0 %v687_v54  ;;  %v738_v54 = vsel %vm410_vm0, %v391_v48, 0.0 }
  0xcd   : > { %v482_v59 = vpop.xlane.xlu1 %481  ;;  %v479_v60 = vpop.xlane.xlu0 %478  ;;  %v741_v63 = vsel %vm410_vm0, %v392_v57, 0.0  ;;  %v409_v57 = vmul.f32 %v1461_v0, %v274_v51 }
  0xce   : > { %819 = vst.msk [vmem:[%s1274_s20 + $0xb8] sm:$0xff] %vm795_vm1, %v482_v59  ;;  %818 = vst.msk [vmem:[%s1274_s20 + $0xb0] sm:$0xff] %vm795_vm1, %v479_v60  ;;  %v259_v59 = vld [vmem:[%s1045_s17 + $0x380] sm:$0xff] }
  0xcf   : > { %v394_v2 = vmul.f32 %v1461_v0, %v259_v59 }
  0xd0   : > { %697 = vadd.xlane.f32.xlu1 %v696_v61  ;;  %694 = vadd.xlane.f32.xlu0 %v693_v62  ;;  %v744_v62 = vsel %vm410_vm0, %v393_v56, 0.0 }
  0xd1   : > { %v488_v4 = vpop.xlane.xlu1 %487  ;;  %v485_v5 = vpop.xlane.xlu0 %484  ;;  %v747_v8 = vsel %vm410_vm0, %v394_v2, 0.0 }
  0xd2   : > { %821 = vst.msk [vmem:[%s1274_s20 + $0xc8] sm:$0xff] %vm795_vm1, %v488_v4  ;;  %820 = vst.msk [vmem:[%s1274_s20 + $0xc0] sm:$0xff] %vm795_vm1, %v485_v5  ;;  %v261_v4 = vld [vmem:[%s1045_s17 + $0x390] sm:$0xff] }
  0xd3   : > { %v396_v10 = vmul.f32 %v1461_v0, %v261_v4 }
  0xd4   : > { %703 = vadd.xlane.f32.xlu1 %v702_v6  ;;  %700 = vadd.xlane.f32.xlu0 %v699_v7  ;;  %v750_v7 = vsel %vm410_vm0, %v395_v1, 0.0 }
  0xd5   : > { %v494_v12 = vpop.xlane.xlu1 %493  ;;  %v491_v13 = vpop.xlane.xlu0 %490  ;;  %v753_v16 = vsel %vm410_vm0, %v396_v10, 0.0 }
  0xd6   : > { %823 = vst.msk [vmem:[%s1274_s20 + $0xd8] sm:$0xff] %vm795_vm1, %v494_v12  ;;  %822 = vst.msk [vmem:[%s1274_s20 + $0xd0] sm:$0xff] %vm795_vm1, %v491_v13  ;;  %v263_v12 = vld [vmem:[%s1045_s17 + $0x3a0] sm:$0xff] }
  0xd7   : > { %v398_v18 = vmul.f32 %v1461_v0, %v263_v12 }
  0xd8   : > { %709 = vadd.xlane.f32.xlu1 %v708_v14  ;;  %706 = vadd.xlane.f32.xlu0 %v705_v15  ;;  %v756_v15 = vsel %vm410_vm0, %v397_v9, 0.0 }
  0xd9   : > { %v500_v20 = vpop.xlane.xlu1 %499  ;;  %v497_v21 = vpop.xlane.xlu0 %496  ;;  %v759_v24 = vsel %vm410_vm0, %v398_v18, 0.0 }
  0xda   : > { %825 = vst.msk [vmem:[%s1274_s20 + $0xe8] sm:$0xff] %vm795_vm1, %v500_v20  ;;  %824 = vst.msk [vmem:[%s1274_s20 + $0xe0] sm:$0xff] %vm795_vm1, %v497_v21  ;;  %v265_v20 = vld [vmem:[%s1045_s17 + $0x3b0] sm:$0xff] }
  0xdb   : > { %v400_v26 = vmul.f32 %v1461_v0, %v265_v20 }
  0xdc   : > { %715 = vadd.xlane.f32.xlu1 %v714_v22  ;;  %712 = vadd.xlane.f32.xlu0 %v711_v23  ;;  %v762_v23 = vsel %vm410_vm0, %v399_v17, 0.0 }
  0xdd   : > { %v506_v28 = vpop.xlane.xlu1 %505  ;;  %v503_v29 = vpop.xlane.xlu0 %502  ;;  %v765_v32 = vsel %vm410_vm0, %v400_v26, 0.0 }
  0xde   : > { %827 = vst.msk [vmem:[%s1274_s20 + $0xf8] sm:$0xff] %vm795_vm1, %v506_v28  ;;  %826 = vst.msk [vmem:[%s1274_s20 + $0xf0] sm:$0xff] %vm795_vm1, %v503_v29  ;;  %v267_v28 = vld [vmem:[%s1045_s17 + $0x3c0] sm:$0xff] }
  0xdf   : > { %v402_v34 = vmul.f32 %v1461_v0, %v267_v28 }
  0xe0   : > { %721 = vadd.xlane.f32.xlu1 %v720_v30  ;;  %718 = vadd.xlane.f32.xlu0 %v717_v31  ;;  %v768_v31 = vsel %vm410_vm0, %v401_v25, 0.0 }
  0xe1   : > { %v512_v36 = vpop.xlane.xlu1 %511  ;;  %v509_v37 = vpop.xlane.xlu0 %508  ;;  %v771_v40 = vsel %vm410_vm0, %v402_v34, 0.0 }
  0xe2   : > { %829 = vst.msk [vmem:[%s1274_s20 + $0x108] sm:$0xff] %vm795_vm1, %v512_v36  ;;  %828 = vst.msk [vmem:[%s1274_s20 + $0x100] sm:$0xff] %vm795_vm1, %v509_v37  ;;  %v269_v36 = vld [vmem:[%s1045_s17 + $0x3d0] sm:$0xff] }
  0xe3   : > { %v404_v42 = vmul.f32 %v1461_v0, %v269_v36 }
  0xe4   : > { %727 = vadd.xlane.f32.xlu1 %v726_v38  ;;  %724 = vadd.xlane.f32.xlu0 %v723_v39  ;;  %v774_v39 = vsel %vm410_vm0, %v403_v33, 0.0 }
  0xe5   : > { %v518_v44 = vpop.xlane.xlu1 %517  ;;  %v515_v45 = vpop.xlane.xlu0 %514  ;;  %v777_v48 = vsel %vm410_vm0, %v404_v42, 0.0 }
  0xe6   : > { %831 = vst.msk [vmem:[%s1274_s20 + $0x118] sm:$0xff] %vm795_vm1, %v518_v44  ;;  %830 = vst.msk [vmem:[%s1274_s20 + $0x110] sm:$0xff] %vm795_vm1, %v515_v45  ;;  %v271_v44 = vld [vmem:[%s1045_s17 + $0x3e0] sm:$0xff] }
  0xe7   : > { %v406_v50 = vmul.f32 %v1461_v0, %v271_v44 }
  0xe8   : > { %733 = vadd.xlane.f32.xlu1 %v732_v46  ;;  %730 = vadd.xlane.f32.xlu0 %v729_v47  ;;  %v780_v47 = vsel %vm410_vm0, %v405_v41, 0.0 }
  0xe9   : > { %v524_v52 = vpop.xlane.xlu1 %523  ;;  %v521_v53 = vpop.xlane.xlu0 %520  ;;  %v783_v56 = vsel %vm410_vm0, %v406_v50, 0.0 }
  0xea   : > { %833 = vst.msk [vmem:[%s1274_s20 + $0x128] sm:$0xff] %vm795_vm1, %v524_v52  ;;  %832 = vst.msk [vmem:[%s1274_s20 + $0x120] sm:$0xff] %vm795_vm1, %v521_v53  ;;  %v273_v52 = vld [vmem:[%s1045_s17 + $0x3f0] sm:$0xff] }
  0xeb   : > { %v408_v58 = vmul.f32 %v1461_v0, %v273_v52 }
  0xec   : > { %739 = vadd.xlane.f32.xlu1 %v738_v54  ;;  %736 = vadd.xlane.f32.xlu0 %v735_v55  ;;  %v786_v55 = vsel %vm410_vm0, %v407_v49, 0.0 }
  0xed   : > { %v530_v60 = vpop.xlane.xlu1 %529  ;;  %v527_v61 = vpop.xlane.xlu0 %526 }
  0xee   : > { %835 = vst.msk [vmem:[%s1274_s20 + $0x138] sm:$0xff] %vm795_vm1, %v530_v60  ;;  %834 = vst.msk [vmem:[%s1274_s20 + $0x130] sm:$0xff] %vm795_vm1, %v527_v61  ;;  %v792_v61 = vsel %vm410_vm0, %v409_v57, 0.0 }
  0xf0   : > { %745 = vadd.xlane.f32.xlu1 %v744_v62  ;;  %742 = vadd.xlane.f32.xlu0 %v741_v63  ;;  %v789_v62 = vsel %vm410_vm0, %v408_v58, 0.0 }
  0xf1   : > { %v536_v5 = vpop.xlane.xlu1 %535  ;;  %v533_v6 = vpop.xlane.xlu0 %532 }
  0xf2   : > { %837 = vst.msk [vmem:[%s1274_s20 + $0x148] sm:$0xff] %vm795_vm1, %v536_v5  ;;  %836 = vst.msk [vmem:[%s1274_s20 + $0x140] sm:$0xff] %vm795_vm1, %v533_v6 }
  0xf4   : > { %751 = vadd.xlane.f32.xlu1 %v750_v7  ;;  %748 = vadd.xlane.f32.xlu0 %v747_v8 }
  0xf5   : > { %v542_v13 = vpop.xlane.xlu1 %541  ;;  %v539_v14 = vpop.xlane.xlu0 %538 }
  0xf6   : > { %839 = vst.msk [vmem:[%s1274_s20 + $0x158] sm:$0xff] %vm795_vm1, %v542_v13  ;;  %838 = vst.msk [vmem:[%s1274_s20 + $0x150] sm:$0xff] %vm795_vm1, %v539_v14 }
  0xf8   : > { %757 = vadd.xlane.f32.xlu1 %v756_v15  ;;  %754 = vadd.xlane.f32.xlu0 %v753_v16 }
  0xf9   : > { %v548_v21 = vpop.xlane.xlu1 %547  ;;  %v545_v22 = vpop.xlane.xlu0 %544 }
  0xfa   : > { %841 = vst.msk [vmem:[%s1274_s20 + $0x168] sm:$0xff] %vm795_vm1, %v548_v21  ;;  %840 = vst.msk [vmem:[%s1274_s20 + $0x160] sm:$0xff] %vm795_vm1, %v545_v22 }
  0xfc   : > { %763 = vadd.xlane.f32.xlu1 %v762_v23  ;;  %760 = vadd.xlane.f32.xlu0 %v759_v24 }
  0xfd   : > { %v554_v29 = vpop.xlane.xlu1 %553  ;;  %v551_v30 = vpop.xlane.xlu0 %550 }
  0xfe   : > { %843 = vst.msk [vmem:[%s1274_s20 + $0x178] sm:$0xff] %vm795_vm1, %v554_v29  ;;  %842 = vst.msk [vmem:[%s1274_s20 + $0x170] sm:$0xff] %vm795_vm1, %v551_v30 }
 0x100   : > { %769 = vadd.xlane.f32.xlu1 %v768_v31  ;;  %766 = vadd.xlane.f32.xlu0 %v765_v32 }
 0x101   : > { %v560_v37 = vpop.xlane.xlu1 %559  ;;  %v557_v38 = vpop.xlane.xlu0 %556 }
 0x102   : > { %845 = vst.msk [vmem:[%s1274_s20 + $0x188] sm:$0xff] %vm795_vm1, %v560_v37  ;;  %844 = vst.msk [vmem:[%s1274_s20 + $0x180] sm:$0xff] %vm795_vm1, %v557_v38 }
 0x104   : > { %775 = vadd.xlane.f32.xlu1 %v774_v39  ;;  %772 = vadd.xlane.f32.xlu0 %v771_v40 }
 0x105   : > { %v566_v45 = vpop.xlane.xlu1 %565  ;;  %v563_v46 = vpop.xlane.xlu0 %562 }
 0x106   : > { %847 = vst.msk [vmem:[%s1274_s20 + $0x198] sm:$0xff] %vm795_vm1, %v566_v45  ;;  %846 = vst.msk [vmem:[%s1274_s20 + $0x190] sm:$0xff] %vm795_vm1, %v563_v46 }
 0x108   : > { %781 = vadd.xlane.f32.xlu1 %v780_v47  ;;  %778 = vadd.xlane.f32.xlu0 %v777_v48 }
 0x109   : > { %v572_v53 = vpop.xlane.xlu1 %571  ;;  %v569_v54 = vpop.xlane.xlu0 %568 }
 0x10a   : > { %849 = vst.msk [vmem:[%s1274_s20 + $0x1a8] sm:$0xff] %vm795_vm1, %v572_v53  ;;  %848 = vst.msk [vmem:[%s1274_s20 + $0x1a0] sm:$0xff] %vm795_vm1, %v569_v54 }
 0x10c   : > { %787 = vadd.xlane.f32.xlu1 %v786_v55  ;;  %784 = vadd.xlane.f32.xlu0 %v783_v56 }
 0x10d   : > { %v578_v59 = vpop.xlane.xlu1 %577  ;;  %v575_v60 = vpop.xlane.xlu0 %574 }
 0x10e   : > { %851 = vst.msk [vmem:[%s1274_s20 + $0x1b8] sm:$0xff] %vm795_vm1, %v578_v59  ;;  %850 = vst.msk [vmem:[%s1274_s20 + $0x1b0] sm:$0xff] %vm795_vm1, %v575_v60 }
 0x110   : > { %793 = vadd.xlane.f32.xlu1 %v792_v61  ;;  %790 = vadd.xlane.f32.xlu0 %v789_v62 }
 0x111   : > { %v584_v0 = vpop.xlane.xlu1 %583  ;;  %v581_v63 = vpop.xlane.xlu0 %580 }
 0x112   : > { %853 = vst.msk [vmem:[%s1274_s20 + $0x1c8] sm:$0xff] %vm795_vm1, %v584_v0  ;;  %852 = vst.msk [vmem:[%s1274_s20 + $0x1c0] sm:$0xff] %vm795_vm1, %v581_v63 }
 0x115   : > { %v590_v1 = vpop.xlane.xlu1 %589  ;;  %v587_v2 = vpop.xlane.xlu0 %586 }
 0x116   : > { %855 = vst.msk [vmem:[%s1274_s20 + $0x1d8] sm:$0xff] %vm795_vm1, %v590_v1  ;;  %854 = vst.msk [vmem:[%s1274_s20 + $0x1d0] sm:$0xff] %vm795_vm1, %v587_v2 }
 0x119   : > { %v596_v3 = vpop.xlane.xlu1 %595  ;;  %v593_v4 = vpop.xlane.xlu0 %592 }
 0x11a   : > { %857 = vst.msk [vmem:[%s1274_s20 + $0x1e8] sm:$0xff] %vm795_vm1, %v596_v3  ;;  %856 = vst.msk [vmem:[%s1274_s20 + $0x1e0] sm:$0xff] %vm795_vm1, %v593_v4 }
 0x11d   : > { %v602_v5 = vpop.xlane.xlu1 %601  ;;  %v599_v6 = vpop.xlane.xlu0 %598 }
 0x11e   : > { %859 = vst.msk [vmem:[%s1274_s20 + $0x1f8] sm:$0xff] %vm795_vm1, %v602_v5  ;;  %858 = vst.msk [vmem:[%s1274_s20 + $0x1f0] sm:$0xff] %vm795_vm1, %v599_v6 }
 0x121   : > { %v608_v7 = vpop.xlane.xlu1 %607  ;;  %v605_v8 = vpop.xlane.xlu0 %604 }
 0x122   : > { %861 = vst.msk [vmem:[%s1274_s20 + $0x208] sm:$0xff] %vm795_vm1, %v608_v7  ;;  %860 = vst.msk [vmem:[%s1274_s20 + $0x200] sm:$0xff] %vm795_vm1, %v605_v8 }
 0x125   : > { %v614_v9 = vpop.xlane.xlu1 %613  ;;  %v611_v10 = vpop.xlane.xlu0 %610 }
 0x126   : > { %863 = vst.msk [vmem:[%s1274_s20 + $0x218] sm:$0xff] %vm795_vm1, %v614_v9  ;;  %862 = vst.msk [vmem:[%s1274_s20 + $0x210] sm:$0xff] %vm795_vm1, %v611_v10 }
 0x129   : > { %v620_v11 = vpop.xlane.xlu1 %619  ;;  %v617_v12 = vpop.xlane.xlu0 %616 }
 0x12a   : > { %865 = vst.msk [vmem:[%s1274_s20 + $0x228] sm:$0xff] %vm795_vm1, %v620_v11  ;;  %864 = vst.msk [vmem:[%s1274_s20 + $0x220] sm:$0xff] %vm795_vm1, %v617_v12 }
 0x12d   : > { %v626_v13 = vpop.xlane.xlu1 %625  ;;  %v623_v14 = vpop.xlane.xlu0 %622 }
 0x12e   : > { %867 = vst.msk [vmem:[%s1274_s20 + $0x238] sm:$0xff] %vm795_vm1, %v626_v13  ;;  %866 = vst.msk [vmem:[%s1274_s20 + $0x230] sm:$0xff] %vm795_vm1, %v623_v14 }
 0x131   : > { %v632_v15 = vpop.xlane.xlu1 %631  ;;  %v629_v16 = vpop.xlane.xlu0 %628 }
 0x132   : > { %869 = vst.msk [vmem:[%s1274_s20 + $0x248] sm:$0xff] %vm795_vm1, %v632_v15  ;;  %868 = vst.msk [vmem:[%s1274_s20 + $0x240] sm:$0xff] %vm795_vm1, %v629_v16 }
 0x135   : > { %v638_v17 = vpop.xlane.xlu1 %637  ;;  %v635_v18 = vpop.xlane.xlu0 %634 }
 0x136   : > { %871 = vst.msk [vmem:[%s1274_s20 + $0x258] sm:$0xff] %vm795_vm1, %v638_v17  ;;  %870 = vst.msk [vmem:[%s1274_s20 + $0x250] sm:$0xff] %vm795_vm1, %v635_v18 }
 0x139   : > { %v644_v19 = vpop.xlane.xlu1 %643  ;;  %v641_v20 = vpop.xlane.xlu0 %640 }
 0x13a   : > { %873 = vst.msk [vmem:[%s1274_s20 + $0x268] sm:$0xff] %vm795_vm1, %v644_v19  ;;  %872 = vst.msk [vmem:[%s1274_s20 + $0x260] sm:$0xff] %vm795_vm1, %v641_v20 }
 0x13d   : > { %v650_v21 = vpop.xlane.xlu1 %649  ;;  %v647_v22 = vpop.xlane.xlu0 %646 }
 0x13e   : > { %875 = vst.msk [vmem:[%s1274_s20 + $0x278] sm:$0xff] %vm795_vm1, %v650_v21  ;;  %874 = vst.msk [vmem:[%s1274_s20 + $0x270] sm:$0xff] %vm795_vm1, %v647_v22 }
 0x141   : > { %v656_v23 = vpop.xlane.xlu1 %655  ;;  %v653_v24 = vpop.xlane.xlu0 %652 }
 0x142   : > { %877 = vst.msk [vmem:[%s1274_s20 + $0x288] sm:$0xff] %vm795_vm1, %v656_v23  ;;  %876 = vst.msk [vmem:[%s1274_s20 + $0x280] sm:$0xff] %vm795_vm1, %v653_v24 }
 0x145   : > { %v662_v25 = vpop.xlane.xlu1 %661  ;;  %v659_v26 = vpop.xlane.xlu0 %658 }
 0x146   : > { %879 = vst.msk [vmem:[%s1274_s20 + $0x298] sm:$0xff] %vm795_vm1, %v662_v25  ;;  %878 = vst.msk [vmem:[%s1274_s20 + $0x290] sm:$0xff] %vm795_vm1, %v659_v26 }
 0x149   : > { %v668_v27 = vpop.xlane.xlu1 %667  ;;  %v665_v28 = vpop.xlane.xlu0 %664 }
 0x14a   : > { %881 = vst.msk [vmem:[%s1274_s20 + $0x2a8] sm:$0xff] %vm795_vm1, %v668_v27  ;;  %880 = vst.msk [vmem:[%s1274_s20 + $0x2a0] sm:$0xff] %vm795_vm1, %v665_v28 }
 0x14d   : > { %v674_v29 = vpop.xlane.xlu1 %673  ;;  %v671_v30 = vpop.xlane.xlu0 %670 }
 0x14e   : > { %883 = vst.msk [vmem:[%s1274_s20 + $0x2b8] sm:$0xff] %vm795_vm1, %v674_v29  ;;  %882 = vst.msk [vmem:[%s1274_s20 + $0x2b0] sm:$0xff] %vm795_vm1, %v671_v30 }
 0x151   : > { %v680_v31 = vpop.xlane.xlu1 %679  ;;  %v677_v32 = vpop.xlane.xlu0 %676 }
 0x152   : > { %885 = vst.msk [vmem:[%s1274_s20 + $0x2c8] sm:$0xff] %vm795_vm1, %v680_v31  ;;  %884 = vst.msk [vmem:[%s1274_s20 + $0x2c0] sm:$0xff] %vm795_vm1, %v677_v32 }
 0x155   : > { %v686_v33 = vpop.xlane.xlu1 %685  ;;  %v683_v34 = vpop.xlane.xlu0 %682 }
 0x156   : > { %887 = vst.msk [vmem:[%s1274_s20 + $0x2d8] sm:$0xff] %vm795_vm1, %v686_v33  ;;  %886 = vst.msk [vmem:[%s1274_s20 + $0x2d0] sm:$0xff] %vm795_vm1, %v683_v34 }
 0x159   : > { %v692_v35 = vpop.xlane.xlu1 %691  ;;  %v689_v36 = vpop.xlane.xlu0 %688 }
 0x15a   : > { %889 = vst.msk [vmem:[%s1274_s20 + $0x2e8] sm:$0xff] %vm795_vm1, %v692_v35  ;;  %888 = vst.msk [vmem:[%s1274_s20 + $0x2e0] sm:$0xff] %vm795_vm1, %v689_v36 }
 0x15d   : > { %v698_v37 = vpop.xlane.xlu1 %697  ;;  %v695_v38 = vpop.xlane.xlu0 %694 }
 0x15e   : > { %891 = vst.msk [vmem:[%s1274_s20 + $0x2f8] sm:$0xff] %vm795_vm1, %v698_v37  ;;  %890 = vst.msk [vmem:[%s1274_s20 + $0x2f0] sm:$0xff] %vm795_vm1, %v695_v38 }
 0x161   : > { %v704_v39 = vpop.xlane.xlu1 %703  ;;  %v701_v40 = vpop.xlane.xlu0 %700 }
 0x162   : > { %893 = vst.msk [vmem:[%s1274_s20 + $0x308] sm:$0xff] %vm795_vm1, %v704_v39  ;;  %892 = vst.msk [vmem:[%s1274_s20 + $0x300] sm:$0xff] %vm795_vm1, %v701_v40 }
 0x165   : > { %v710_v41 = vpop.xlane.xlu1 %709  ;;  %v707_v42 = vpop.xlane.xlu0 %706 }
 0x166   : > { %895 = vst.msk [vmem:[%s1274_s20 + $0x318] sm:$0xff] %vm795_vm1, %v710_v41  ;;  %894 = vst.msk [vmem:[%s1274_s20 + $0x310] sm:$0xff] %vm795_vm1, %v707_v42 }
 0x169   : > { %v716_v43 = vpop.xlane.xlu1 %715  ;;  %v713_v44 = vpop.xlane.xlu0 %712 }
 0x16a   : > { %897 = vst.msk [vmem:[%s1274_s20 + $0x328] sm:$0xff] %vm795_vm1, %v716_v43  ;;  %896 = vst.msk [vmem:[%s1274_s20 + $0x320] sm:$0xff] %vm795_vm1, %v713_v44 }
 0x16d   : > { %v722_v45 = vpop.xlane.xlu1 %721  ;;  %v719_v46 = vpop.xlane.xlu0 %718 }
 0x16e   : > { %899 = vst.msk [vmem:[%s1274_s20 + $0x338] sm:$0xff] %vm795_vm1, %v722_v45  ;;  %898 = vst.msk [vmem:[%s1274_s20 + $0x330] sm:$0xff] %vm795_vm1, %v719_v46 }
 0x171   : > { %v728_v47 = vpop.xlane.xlu1 %727  ;;  %v725_v48 = vpop.xlane.xlu0 %724 }
 0x172   : > { %901 = vst.msk [vmem:[%s1274_s20 + $0x348] sm:$0xff] %vm795_vm1, %v728_v47  ;;  %900 = vst.msk [vmem:[%s1274_s20 + $0x340] sm:$0xff] %vm795_vm1, %v725_v48 }
 0x175   : > { %v734_v49 = vpop.xlane.xlu1 %733  ;;  %v731_v50 = vpop.xlane.xlu0 %730 }
 0x176   : > { %903 = vst.msk [vmem:[%s1274_s20 + $0x358] sm:$0xff] %vm795_vm1, %v734_v49  ;;  %902 = vst.msk [vmem:[%s1274_s20 + $0x350] sm:$0xff] %vm795_vm1, %v731_v50 }
 0x179   : > { %v740_v51 = vpop.xlane.xlu1 %739  ;;  %v737_v52 = vpop.xlane.xlu0 %736 }
 0x17a   : > { %905 = vst.msk [vmem:[%s1274_s20 + $0x368] sm:$0xff] %vm795_vm1, %v740_v51  ;;  %904 = vst.msk [vmem:[%s1274_s20 + $0x360] sm:$0xff] %vm795_vm1, %v737_v52 }
 0x17d   : > { %v746_v53 = vpop.xlane.xlu1 %745  ;;  %v743_v54 = vpop.xlane.xlu0 %742 }
 0x17e   : > { %907 = vst.msk [vmem:[%s1274_s20 + $0x378] sm:$0xff] %vm795_vm1, %v746_v53  ;;  %906 = vst.msk [vmem:[%s1274_s20 + $0x370] sm:$0xff] %vm795_vm1, %v743_v54 }
 0x181   : > { %v752_v55 = vpop.xlane.xlu1 %751  ;;  %v749_v56 = vpop.xlane.xlu0 %748 }
 0x182   : > { %909 = vst.msk [vmem:[%s1274_s20 + $0x388] sm:$0xff] %vm795_vm1, %v752_v55  ;;  %908 = vst.msk [vmem:[%s1274_s20 + $0x380] sm:$0xff] %vm795_vm1, %v749_v56 }
 0x185   : > { %v758_v57 = vpop.xlane.xlu1 %757  ;;  %v755_v58 = vpop.xlane.xlu0 %754 }
 0x186   : > { %911 = vst.msk [vmem:[%s1274_s20 + $0x398] sm:$0xff] %vm795_vm1, %v758_v57  ;;  %910 = vst.msk [vmem:[%s1274_s20 + $0x390] sm:$0xff] %vm795_vm1, %v755_v58 }
 0x189   : > { %v764_v59 = vpop.xlane.xlu1 %763  ;;  %v761_v60 = vpop.xlane.xlu0 %760 }
 0x18a   : > { %913 = vst.msk [vmem:[%s1274_s20 + $0x3a8] sm:$0xff] %vm795_vm1, %v764_v59  ;;  %912 = vst.msk [vmem:[%s1274_s20 + $0x3a0] sm:$0xff] %vm795_vm1, %v761_v60 }
 0x18d   : > { %v770_v61 = vpop.xlane.xlu1 %769  ;;  %v767_v62 = vpop.xlane.xlu0 %766 }
 0x18e   : > { %915 = vst.msk [vmem:[%s1274_s20 + $0x3b8] sm:$0xff] %vm795_vm1, %v770_v61  ;;  %914 = vst.msk [vmem:[%s1274_s20 + $0x3b0] sm:$0xff] %vm795_vm1, %v767_v62 }
 0x191   : > { %v776_v0 = vpop.xlane.xlu1 %775  ;;  %v773_v63 = vpop.xlane.xlu0 %772 }
 0x192   : > { %917 = vst.msk [vmem:[%s1274_s20 + $0x3c8] sm:$0xff] %vm795_vm1, %v776_v0  ;;  %916 = vst.msk [vmem:[%s1274_s20 + $0x3c0] sm:$0xff] %vm795_vm1, %v773_v63 }
 0x195   : > { %v782_v1 = vpop.xlane.xlu1 %781  ;;  %v779_v2 = vpop.xlane.xlu0 %778 }
 0x196   : > { %919 = vst.msk [vmem:[%s1274_s20 + $0x3d8] sm:$0xff] %vm795_vm1, %v782_v1  ;;  %918 = vst.msk [vmem:[%s1274_s20 + $0x3d0] sm:$0xff] %vm795_vm1, %v779_v2 }
 0x199   : > { %v788_v3 = vpop.xlane.xlu1 %787  ;;  %v785_v4 = vpop.xlane.xlu0 %784 }
 0x19a   : > { %921 = vst.msk [vmem:[%s1274_s20 + $0x3e8] sm:$0xff] %vm795_vm1, %v788_v3  ;;  %920 = vst.msk [vmem:[%s1274_s20 + $0x3e0] sm:$0xff] %vm795_vm1, %v785_v4 }
 0x19d   : > { %v794_v5 = vpop.xlane.xlu1 %793  ;;  %v791_v6 = vpop.xlane.xlu0 %790 }
 0x19e   : > { %923 = vst.msk [vmem:[%s1274_s20 + $0x3f8] sm:$0xff] %vm795_vm1, %v794_v5  ;;  %922 = vst.msk [vmem:[%s1274_s20 + $0x3f0] sm:$0xff] %vm795_vm1, %v791_v6 }
 0x19f PF: > { %s12_s9 = sadd.s32 1, %s1007_s9  }
 0x1a0   : > { %p9_p4 = scmp.ge.s32.totalorder %s12_s9, 6  }
 0x1a2   :  { %11 = sbr.rel (!%p9_p4) target bundleno = 1 (0x1), region = 58 }

</bundles_post_ra>
